<compile_context>
chip_gen: v7x
topology: tpu7x:2x2x1
jax: 0.10.0
libtpu: 0.0.40
codegen_flags: <defaults>
</compile_context>

<pallas_src>
import functools

import jax
import jax.numpy as jnp
from jax.experimental import pallas as pl
from jax.experimental.pallas import tpu as pltpu


def _pick_tb(h: int, L: int, target_bytes: int = 2 << 20) -> int:
    """Rows of the (h, L) slab per grid step.

    - multiple of 8 (or == h) to satisfy the second-minor block tiling rule,
    - block bytes <= ~target_bytes so the double-buffered output plus the
      elementwise temporaries of the fused sin fit comfortably in scoped VMEM,
    - >= 2 grid steps whenever h > 8 so both v7x TensorCores get work
      (costs at most one extra ~0.35us grid step on single-TC v5e/v6e).
    """
    if h <= 8:
        return h
    half = max(8, 8 * ((h // 2) // 8))                   # ~h/2, multiple of 8
    cap = max(8, 8 * ((target_bytes // (4 * L)) // 8))   # rows per ~2 MiB block
    return min(half, cap)


def _sincos_kernel(coef_ref, phase_ref, out_ref, *, tb: int):
    """One grid step writes rows [i0, i0 + tb) of the (h, L) slab:
       out[i, l] = sin(i * coef[l] + phase[l])."""
    i0 = pl.program_id(0) * tb
    rows = (i0 + jax.lax.broadcasted_iota(jnp.int32, (tb, 1), 0)).astype(
        jnp.float32
    )                                                  # (tb, 1): global row i
    # Single fused FMA + sin + lane-dense store; j-dependent lanes have
    # coef == 0 so they are constant across rows (EUP slots are otherwise
    # idle in this store-bound kernel, so the redundant sin is free).
    out_ref[...] = jnp.sin(rows * coef_ref[...] + phase_ref[...])


def sincos_pos_embed(h: int, w: int, embed_dim: int, cls_token: bool = False):
    assert embed_dim % 2 == 0, embed_dim
    assert embed_dim % 4 == 0, "sin/cos split requires embed_dim % 4 == 0"
    q = embed_dim // 4
    L = w * embed_dim

    # Tiny one-time tables (O(w * embed_dim) work, done once in XLA).
    omega = 1.0 / (10000.0 ** (jnp.arange(q, dtype=jnp.float32) / q))   # (q,)
    half_pi = jnp.float32(jnp.pi / 2)
    jw = jnp.arange(w, dtype=jnp.float32)[:, None] * omega[None, :]     # (w, q)
    zeros = jnp.zeros((w, q), jnp.float32)
    om_w = jnp.broadcast_to(omega[None, :], (w, q))

    # Per q-group of lane d inside column j (cos(x) computed as sin(x + pi/2)):
    #   d in [0,q)  : coef = 0     phase = j*omega          -> sin(j*omega)
    #   d in [q,2q) : coef = 0     phase = j*omega + pi/2   -> cos(j*omega)
    #   d in [2q,3q): coef = omega phase = 0                -> sin(i*omega)
    #   d in [3q,4q): coef = omega phase = pi/2             -> cos(i*omega)
    phase = jnp.concatenate([jw, jw + half_pi, zeros, zeros + half_pi],
                            axis=1).reshape(1, L)
    coef = jnp.concatenate([zeros, zeros, om_w, om_w], axis=1).reshape(1, L)

    tb = _pick_tb(h, L)
    grid = (pl.cdiv(h, tb),)

    out2d = pl.pallas_call(
        functools.partial(_sincos_kernel, tb=tb),
        out_shape=jax.ShapeDtypeStruct((h, L), jnp.float32),
        grid_spec=pltpu.PrefetchScalarGridSpec(
            num_scalar_prefetch=0,
            grid=grid,
            in_specs=[
                pl.BlockSpec((1, L), lambda i: (0, 0)),   # coef, VMEM-resident
                pl.BlockSpec((1, L), lambda i: (0, 0)),   # phase, VMEM-resident
            ],
            out_specs=pl.BlockSpec((tb, L), lambda i: (i, 0)),
        ),
        compiler_params=pltpu.CompilerParams(
            dimension_semantics=("parallel",),
            vmem_limit_bytes=32 * 1024 * 1024,
        ),
    )(coef, phase)

    pos = out2d.reshape(h * w, embed_dim)   # free row-major reshape
    if cls_token:
        # TODO(synk): prepending the zero cls row costs one extra XLA pass over
        # the table; a +1-row offset write is not expressible with output
        # BlockSpecs, and a manual-DMA path would force a non-lane-dense
        # (tb*w, embed_dim) scratch relayout, so the copy is kept here.
        pos = jnp.concatenate(
            [jnp.zeros((1, embed_dim), jnp.float32), pos], axis=0)
    return pos


def _reference_sincos(h: int, w: int, embed_dim: int, cls_token: bool = False):
    # Pure-JAX transcription of the PyTorch module, used for verification.
    D = embed_dim // 2
    omega = 1.0 / (10000.0 ** (jnp.arange(D // 2, dtype=jnp.float32) / (D / 2.0)))
    gw, gh = jnp.meshgrid(
        jnp.arange(w, dtype=jnp.float32),
        jnp.arange(h, dtype=jnp.float32),
        indexing="xy",
    )  # both (h, w); gw[i, j] = j, gh[i, j] = i

    def emb1d(pos):
        out = jnp.einsum("m,d->md", pos.reshape(-1), omega)
        return jnp.concatenate([jnp.sin(out), jnp.cos(out)], axis=1)

    pos = jnp.concatenate([emb1d(gw), emb1d(gh)], axis=1)
    if cls_token:
        pos = jnp.concatenate([jnp.zeros((1, embed_dim), jnp.float32), pos], axis=0)
    return pos


if __name__ == "__main__":
    # The module's forward takes only scalar ints; PRNGKey kept for the
    # determinism convention (no tensor inputs are needed).
    _ = jax.random.PRNGKey(0)

    configs = [
        (16, 16, 32),   # 2 grid steps, 512-lane rows
        (8, 12, 64),    # single full-height block (h <= 8), L = 768
        (14, 16, 32),   # ragged last block (tb=8 over h=14), L = 512
        (10, 14, 32),   # ragged last block AND L = 448 (non-multiple-of-128)
    ]
    for (h, w, embed_dim) in configs:
        for cls_token in (False, True):
            out = jax.block_until_ready(
                sincos_pos_embed(h, w, embed_dim, cls_token=cls_token))
            ref = _reference_sincos(h, w, embed_dim, cls_token=cls_token)
            expected_rows = h * w + (1 if cls_token else 0)
            assert out.shape == (expected_rows, embed_dim), out.shape
            assert out.dtype == jnp.float32
            assert jnp.allclose(out, ref, atol=3e-5, rtol=0.0), float(
                jnp.max(jnp.abs(out - ref))
            )

    print("KERNEL_OK")
</pallas_src>

<mosaic_0001>
module attributes {stable_mosaic.version = 11 : i64} {
  func.func @_sincos_kernel(%arg0: i32, %arg1: memref<1x512xf32, #tpu.memory_space<vmem>>, %arg2: memref<1x512xf32, #tpu.memory_space<vmem>>, %arg3: memref<8x512xf32, #tpu.memory_space<vmem>>) attributes {dimension_semantics = [#tpu.dimension_semantics<parallel>], iteration_bounds = array<i64: 2>, scalar_prefetch = 0 : i64, scratch_operands = 0 : i64, tpu.core_type = #tpu.core_type<tc>, window_params = [{pipeline_mode = #tpu.pipeline_mode<synchronous>, transform_indices = @transform_0, window_bounds = array<i64: 1, 512>}, {pipeline_mode = #tpu.pipeline_mode<synchronous>, transform_indices = @transform_1, window_bounds = array<i64: 1, 512>}, {transform_indices = @transform_2, window_bounds = array<i64: 8, 512>}]} {
    %c8_i32 = arith.constant 8 : i32
    %0 = arith.muli %arg0, %c8_i32 : i32
    %1 = tpu.iota {dimensions = array<i32: 0>} : vector<8x1xi32>
    %2 = vector.broadcast %0 : i32 to vector<8x1xi32>
    %3 = arith.addi %2, %1 : vector<8x1xi32>
    %4 = arith.sitofp %3 : vector<8x1xi32> to vector<8x1xf32>
    %c0 = arith.constant 0 : index
    %c0_0 = arith.constant 0 : index
    %5 = vector.load %arg1[%c0, %c0_0] : memref<1x512xf32, #tpu.memory_space<vmem>>, vector<1x512xf32>
    %6 = vector.broadcast %4 : vector<8x1xf32> to vector<8x512xf32>
    %7 = vector.broadcast %5 : vector<1x512xf32> to vector<8x512xf32>
    %8 = arith.mulf %6, %7 : vector<8x512xf32>
    %c0_1 = arith.constant 0 : index
    %c0_2 = arith.constant 0 : index
    %9 = vector.load %arg2[%c0_1, %c0_2] : memref<1x512xf32, #tpu.memory_space<vmem>>, vector<1x512xf32>
    %10 = vector.broadcast %9 : vector<1x512xf32> to vector<8x512xf32>
    %11 = arith.addf %8, %10 : vector<8x512xf32>
    %12 = math.sin %11 : vector<8x512xf32>
    %c0_3 = arith.constant 0 : index
    %c0_4 = arith.constant 0 : index
    %13 = vector.load %arg3[%c0_3, %c0_4] : memref<8x512xf32, #tpu.memory_space<vmem>>, vector<8x512xf32>
    tpu.vector_store %arg3[%c0_3, %c0_4], %12 {strides = array<i32>} : memref<8x512xf32, #tpu.memory_space<vmem>>, vector<8x512xf32>,
    return
  }
  func.func @transform_0(%arg0: i32) -> (i32, i32) {
    %c0_i32 = arith.constant 0 : i32
    %c0_i32_0 = arith.constant 0 : i32
    %c0_i32_1 = arith.constant 0 : i32
    return %c0_i32, %c0_i32_0 : i32, i32
  }
  func.func @transform_1(%arg0: i32) -> (i32, i32) {
    %c0_i32 = arith.constant 0 : i32
    %c0_i32_0 = arith.constant 0 : i32
    %c0_i32_1 = arith.constant 0 : i32
    return %c0_i32, %c0_i32_0 : i32, i32
  }
  func.func @transform_2(%arg0: i32) -> (i32, i32) {
    %c0_i32 = arith.constant 0 : i32
    %c0_i32_0 = arith.constant 0 : i32
    return %arg0, %c0_i32 : i32, i32
  }
}

</mosaic_0001>

<bundles_post_ra>
// kernel: tpu_custom_call.1
= control target key start
LH: loop header
LB: loop body
LE: loop exit
PB: predicated region body
PF: predicated region fallthrough
CT: control target
= control target key end

     0   :  { %7 = vsyncpa [#allocation3], 0  ;;  %s1479_s0 = inlined_call_operand.hbm [shape: f32[1,512], index: 0, kind: input, shape index: {}]   ;;  %s1480_s1 = inlined_call_operand.hbm [shape: f32[1,512], index: 1, kind: input, shape index: {}]   ;;  %s1481_s2 = inlined_call_operand.hbm [shape: f32[16,512], index: 2, kind: output, shape index: {}]  }
   0x1   :  { %8 = vsyncpa [#allocation6], 0 }
   0x2   :  { %9 = vsyncpa [#allocation4], 0 }
   0x3   :  { %11 = vsyncpa [#allocation4 + $0x1], 0  ;;  %s991_s9 = smov 0   ;;  %s993_s10 = smov 0  }
   0x4   :  { %s995_s11 = smov 0   ;;  %s997_s12 = smov 0  }
   0x5 LB: > { %s1012_s13 = sadd.s32 4294967295, %s965_s12   ;;  %s710_s14 = sadd.s32 4294967294, %s965_s12   ;;  %s965_s12 = sphi %s997_s12, %s1503_s12   ;;  %s961_s11 = sphi %s995_s11, %s1502_s11   ;;  %s957_s10 = sphi %s993_s10, %s1501_s10   ;;  %s953_s9 = sphi %s991_s9, %s1500_s9  }
   0x6   : > { %s1016_s15 = sadd.s32 1, %s965_s12   ;;  %s66_s16 = sadd.s32 1, %s961_s11 }
   0x7   : > { %s63_s17 = ssub.s32 %s965_s12, %s1016_s15  ;;  %p76_p0 = scmp.ne.s32.totalorder %s961_s11, %s957_s10 }
   0x8   : > { %p64_p1 = scmp.eq.s32.totalorder %s63_s17, 0  ;;  %p77_p2 = scmp.eq.s32.totalorder %s1012_s13, 1 }
   0x9   : > { %p82_p3 = scmp.ne.s32.totalorder %s957_s10, %s953_s9  ;;  %p83_p4 = scmp.eq.s32.totalorder %s710_s14, 1 }
   0xa   : > { %s1027_s18 = scalar_select %p64_p1, %s961_s11, %s66_s16  }
   0xb   : > { %p1029_p5 = por %p77_p2, %p76_p0  ;;  %p1033_p6 = por %p83_p4, %p82_p3 }
   0xc   : > { %p711_p7 = scmp.ge.s32.totalorder %s965_s12, 1  ;;  %p90_p8 = scmp.lt.s32.totalorder %s965_s12, 3 }
   0xd   : > { %s1485_s19 = scalar_select %p1029_p5, 1, 0 }
   0xe   : > { %s1486_s20 = scalar_select %p1033_p6, 1, 0 }
   0xf   : > { %p1482_p9 = scmp.eq.s32.totalorder %s1012_s13, 0  ;;  %p1040_p10 = pnand %p711_p7, %p90_p8 }
  0x10   : > { %s967_s22 = smov [#allocation2]   ;;  %s968_s24 = smov [#allocation5]  }
  0x11   : > { %s1487_s21 = scalar_select %p1040_p10, 1, 0 }
  0x12   : > { %s103_s23 = sshll.u32 %s967_s22, 4  ;;  %p767_p11 = pneg %p1040_p10  ;;  %s104_s23 = int_to_ptr.vmem [resolvable:$true] %s103_s23 }
  0x13   : > { %s114_s25 = sshll.u32 %s968_s24, 4  ;;  %s839_s29 = scalar_lea.hbm %s1479_s0, 64  ;;  %s1052_s25 = int_to_ptr.vmem [resolvable:$true] %s114_s25 }
  0x14   : > { %p1048_p12 = pnand %p1482_p9, %p767_p11  ;;  %p840_p13 = scmp.ne.s32.totalorder %s1479_s0, %s839_s29 }
  0x15   : > { %p846_p3 = scmp.lt.u32.totalorder %s839_s29, %s1479_s0 }
  0x16   : > { %p841_p0 = pneg %p1048_p12 }
  0x18   : > { %p842_p1 = pnand %p841_p0, %p840_p13 }
  0x1a   : > { %p843_p2 = pneg %p842_p1 }
  0x1c   : > { %p848_p4 = pnand %p846_p3, %p843_p2 }
  0x1e   : > { %851 = shalt.err (!%p848_p4)
}
  0x1f   : > { %s852_s6 = scalar_lea.vmem %s104_s23, 64  ;;  %p860_p9 = scmp.lt.s32.totalorder %s104_s23, %s104_s23 }
  0x20   : > { %p853_p7 = scmp.ne.s32.totalorder %s104_s23, %s852_s6  ;;  %p861_p6 = scmp.lt.s32.totalorder %s852_s6, %s852_s6 }
  0x22   : > { %p855_p8 = pnand %p853_p7, %p841_p0  ;;  %p862_p5 = por %p861_p6, %p860_p9 }
  0x24   : > { %p856_p11 = pneg %p855_p8 }
  0x26   : > { %p863_p10 = pnand %p862_p5, %p856_p11 }
  0x28   : > { %866 = shalt.err (!%p863_p10)
}
  0x29   : > { %770 = dma.hbm_to_vmem [thread:$0]  (!%p1048_p12), %s1479_s0, 64, %s104_s23, [#allocation3]  }
  0x2a   : > { %s867_s17 = scalar_lea.hbm %s1480_s1, 64 }
  0x2b   : > { %p868_p13 = scmp.ne.s32.totalorder %s1480_s1, %s867_s17  ;;  %p874_p9 = scmp.lt.u32.totalorder %s867_s17, %s1480_s1 }
  0x2d   : > { %p870_p6 = pnand %p868_p13, %p841_p0 }
  0x2f   : > { %p871_p5 = pneg %p870_p6 }
  0x31   : > { %p876_p10 = pnand %p874_p9, %p871_p5 }
  0x33   : > { %879 = shalt.err (!%p876_p10)
}
  0x34   : > { %s880_s23 = scalar_lea.vmem %s1052_s25, 64  ;;  %p888_p4 = scmp.lt.s32.totalorder %s1052_s25, %s1052_s25 }
  0x35   : > { %p881_p1 = scmp.ne.s32.totalorder %s1052_s25, %s880_s23  ;;  %p889_p7 = scmp.lt.s32.totalorder %s880_s23, %s880_s23 }
  0x37   : > { %p883_p2 = pnand %p881_p1, %p841_p0  ;;  %p890_p8 = por %p889_p7, %p888_p4 }
  0x39   : > { %p884_p3 = pneg %p883_p2 }
  0x3b   : > { %p891_p11 = pnand %p890_p8, %p884_p3 }
  0x3d   : > { %894 = shalt.err (!%p891_p11)
}
  0x3e   : > { %773 = dma.hbm_to_vmem [thread:$0]  (!%p1048_p12), %s1480_s1, 64, %s1052_s25, [#allocation6]  }
  0x3f   : > { %p1489_p13 = scmp.ne.s32.totalorder %s1487_s21, 0 }
  0x40   : > { %p1490_p6 = scmp.eq.s32.totalorder (!%p1489_p13), %s1012_s13, 0 }
  0x41   : > { %127 = sbr.rel (%p1489_p13) target bundleno = 237 (0xed), region = 28 }
  0x48   : > { %940 = dma.done.wait (%p1490_p6), [#allocation3], 64   ;;  %p1491_p0 = pmov %p1490_p6 }
  0x4a   : > { %942 = vsyncadd (%p1491_p0), [#allocation3], 4294967232  ;;  %p1492_p5 = pmov %p1491_p0 }
  0x4b   : > { %p1493_p9 = pmov %p1491_p0 }
  0x4c   : > { %944 = dma.done.wait (%p1492_p5), [#allocation6], 64  }
  0x4d   : > { %946 = vsyncadd (%p1493_p9), [#allocation6], 4294967232  ;;  %s718_s26 = sshll.u32 %s1012_s13, 3  ;;  %v149_v0 = vlaneseq  ;;  %v154_v8 = vld [vmem:[#allocation2] sm:$0xf]  ;;  %s145_s21 = sand.u32 1, %s957_s10  }
  0x4e   : > { %v151_v1 = vstv %s718_s26  ;;  %v180_v9 = vld [vmem:[#allocation5] sm:$0xf]  ;;  %v969_v54 = vmov 683565275   ;;  %v970_v56 = vmov 2475754826  }
  0x4f   : > { %v150_v2 = vshrl.u32 %v149_v0, 7  ;;  %v971_v58 = vmov 2131351028   ;;  %v972_v60 = vmov 2102212464   ;;  %s717_s25 = sshll.u32 %s145_s21, 5 }
  0x50   : > { %v973_v62 = vmov 920167782   ;;  %s1408_s3 = scalar_lea.vmem [#allocation7], %s717_s25  ;;  %s740_s4 = sshll.u32 %s1012_s13, 9 }
  0x51   : > { %v152_v3 = vadd.s32 %v151_v1, %v150_v2  ;;  %v158_v4 = vsub.s32 0, %v150_v2  ;;  %v162_v5 = vsub.s32 1, %v150_v2  ;;  %v166_v6 = vsub.s32 2, %v150_v2  ;;  %s641_s5 = sshll.u32 %s1408_s3, 4  ;;  %s1434_s8 = scalar_lea.hbm %s1481_s2, %s740_s4  ;;  %s1436_s5 = int_to_ptr.vmem [resolvable:$true] %s641_s5 }
  0x52   : > { %v170_v24 = vsub.s32 3, %v150_v2  ;;  %s627_s13 = scalar_lea.sflag [#allocation4], %s145_s21  ;;  %s895_s14 = scalar_lea.vmem %s1436_s5, 512 }
  0x53   : > { %v153_v7 = vcvt.s32.f32 %v152_v3  ;;  %v159_v10 = vrot.slane %v154_v8, %v158_v4  ;;  %v163_v11 = vrot.slane %v154_v8, %v162_v5  ;;  %v167_v12 = vrot.slane %v154_v8, %v166_v6  ;;  %p896_p12 = scmp.ne.s32.totalorder %s1436_s5, %s895_s14  ;;  %p1498_p10 = scmp.ne.s32.totalorder %s1485_s19, 0 }
  0x54   : > { %v185_v13 = vrot.slane %v180_v9, %v158_v4  ;;  %v189_v14 = vrot.slane %v180_v9, %v162_v5  ;;  %v193_v15 = vrot.slane %v180_v9, %v166_v6  ;;  %v171_v33 = vrot.slane %v154_v8, %v170_v24  ;;  %s975_s16 = smov [#allocation7]  }
  0x55   : > { %v176_v16 = vmul.f32 %v159_v10, %v153_v7  ;;  %v177_v17 = vmul.f32 %v163_v11, %v153_v7  ;;  %v178_v18 = vmul.f32 %v167_v12, %v153_v7  ;;  %v1130_v43 = vrot.slane %v180_v9, %v170_v24  ;;  %p897_p1 = pnand %p896_p12, %p1498_p10  ;;  %s899_s17 = sshll.u32 %s975_s16, 4  ;;  %s900_s17 = int_to_ptr.vmem [resolvable:$false] %s899_s17 }
  0x56   : > { %v1128_v42 = vmul.f32 %v171_v33, %v153_v7  ;;  %v974_v6 = vmov 1326507024   ;;  %s901_s22 = scalar_lea.vmem %s900_s17, 1024  ;;  %p902_p3 = scmp.lt.s32.totalorder %s1436_s5, %s900_s17 }
  0x57   : > { %v1112_v19 = vadd.f32 %v185_v13, %v176_v16  ;;  %v1114_v20 = vadd.f32 %v189_v14, %v177_v17  ;;  %v1116_v21 = vadd.f32 %v193_v15, %v178_v18  ;;  %p898_p2 = pneg %p897_p1  ;;  %p903_p4 = scmp.lt.s32.totalorder %s901_s22, %s895_s14 }
  0x59   : > { %v206_v22 = vand.u32 2147483647, %v1112_v19  ;;  %v209_v23 = vand.u32 2139095040, %v1112_v19  ;;  %v310_v25 = vand.u32 2147483647, %v1114_v20  ;;  %v313_v26 = vand.u32 2139095040, %v1114_v20  ;;  %p904_p7 = por %p903_p4, %p902_p3 }
  0x5a   : > { %v417_v31 = vand.u32 2139095040, %v1116_v21  ;;  %v414_v40 = vand.u32 2147483647, %v1116_v21  ;;  %vm208_vm13 = vcmp.lt.s32.totalorder %v1112_v19, 0 }
  0x5b   : > { %v210_v27 = vshrl.u32 %v209_v23, 23  ;;  %v213_v28 = vand.u32 8388607, %v206_v22  ;;  %v314_v29 = vshrl.u32 %v313_v26, 23  ;;  %v317_v30 = vand.u32 8388607, %v310_v25  ;;  %p905_p8 = pnand %p904_p7, %p898_p2 }
  0x5c   : > { %v418_v35 = vshrl.u32 %v417_v31, 23  ;;  %v1138_v51 = vand.u32 8388607, %v414_v40  ;;  %vm1248_vm15 = vcmp.le.f32.partialorder %v206_v22, 0.7853982 }
  0x5d   : > { %v719_v32 = vadd.s32 4294967169, %v210_v27  ;;  %v723_v34 = vadd.s32 4294967169, %v314_v29  ;;  %v214_v36 = vor.u32 8388608, %v213_v28  ;;  %v318_v38 = vor.u32 8388608, %v317_v30 }
  0x5e   : > { %v727_v41 = vadd.s32 4294967169, %v418_v35 }
  0x5f   : > { %v216_v37 = vadd.s32 1, %v719_v32  ;;  %v320_v39 = vadd.s32 1, %v723_v34  ;;  %v1132_v47 = vshll.u32 %v214_v36, 8  ;;  %v1134_v50 = vshll.u32 %v318_v38, 8 }
  0x60   : > { %v1140_v52 = vadd.s32 1, %v727_v41 }
  0x61   : > { %vm217_vm0 = vcmp.gt.s32.totalorder %v216_v37, 0  ;;  %vm321_vm1 = vcmp.gt.s32.totalorder %v320_v39, 0 }
  0x62   : > { %v218_v44 = vsel %vm217_vm0, %v216_v37, 0  ;;  %v322_v48 = vsel %vm321_vm1, %v320_v39, 0  ;;  %vm425_vm6 = vcmp.gt.s32.totalorder %v1140_v52, 0 }
  0x63   : > { %v219_v45 = vshrl.u32 %v218_v44, 5  ;;  %v220_v46 = vand.u32 31, %v218_v44  ;;  %v324_v49 = vand.u32 31, %v322_v48  ;;  %v1147_v0 = vshrl.u32 %v322_v48, 5 }
  0x65   : > { %v221_v53 = vsub.s32 32, %v220_v46  ;;  %v223_v55 = vshll.u32 %v969_v54, %v220_v46  ;;  %v226_v57 = vshll.u32 %v970_v56, %v220_v46  ;;  %v229_v59 = vshll.u32 %v971_v58, %v220_v46 }
  0x66   : > { %v232_v61 = vshll.u32 %v972_v60, %v220_v46  ;;  %v235_v63 = vshll.u32 %v973_v62, %v220_v46  ;;  %vm238_vm2 = vcmp.lt.s32.totalorder %v219_v45, 1  ;;  %vm239_vm3 = vcmp.lt.s32.totalorder %v219_v45, 2 }
  0x67   : > { %v222_v1 = vshrl.u32 %v969_v54, %v221_v53  ;;  %v224_v2 = vshrl.u32 %v970_v56, %v221_v53  ;;  %v227_v3 = vshrl.u32 %v971_v58, %v221_v53  ;;  %v230_v4 = vshrl.u32 %v972_v60, %v221_v53 }
  0x68   : > { %v233_v5 = vshrl.u32 %v973_v62, %v221_v53  ;;  %v236_v7 = vshrl.u32 %v974_v6, %v221_v53  ;;  %vm241_vm4 = vcmp.lt.s32.totalorder %v219_v45, 4  ;;  %v325_v11 = vsub.s32 32, %v324_v49 }
  0x69   : > { %v225_v8 = vor.u32 %v224_v2, %v223_v55  ;;  %v228_v9 = vor.u32 %v227_v3, %v226_v57  ;;  %v231_v10 = vor.u32 %v230_v4, %v229_v59  ;;  %vm240_vm5 = vcmp.lt.s32.totalorder %v219_v45, 3 }
  0x6a   : > { %v234_v12 = vor.u32 %v233_v5, %v232_v61  ;;  %v237_v13 = vor.u32 %v236_v7, %v235_v63  ;;  %v327_v14 = vshll.u32 %v969_v54, %v324_v49  ;;  %v330_v27 = vshll.u32 %v970_v56, %v324_v49 }
  0x6b   : > { %v242_v15 = vsel %vm238_vm2, %v222_v1, %v225_v8  ;;  %v243_v16 = vsel %vm241_vm4, %v231_v10, 2102212464  ;;  %v246_v17 = vsel %vm238_vm2, %v225_v8, %v228_v9  ;;  %v250_v18 = vsel %vm238_vm2, %v228_v9, %v231_v10 }
  0x6c   : > { %v244_v23 = vsel %vm240_vm5, %v228_v9, %v243_v16  ;;  %v247_v24 = vsel %vm241_vm4, %v234_v12, 920167782  ;;  %v251_v26 = vsel %vm241_vm4, %v237_v13, 1326507024  ;;  %v326_v30 = vshrl.u32 %v969_v54, %v325_v11 }
  0x6d   : > { %v248_v28 = vsel %vm240_vm5, %v231_v10, %v247_v24  ;;  %v252_v29 = vsel %vm240_vm5, %v234_v12, %v251_v26  ;;  %v328_v31 = vshrl.u32 %v970_v56, %v325_v11  ;;  %v245_v32 = vsel %vm239_vm3, %v242_v15, %v244_v23 }
  0x6e   : > { %v249_v33 = vsel %vm239_vm3, %v246_v17, %v248_v28  ;;  %v253_v34 = vsel %vm239_vm3, %v250_v18, %v252_v29  ;;  %v331_v35 = vshrl.u32 %v971_v58, %v325_v11  ;;  %v333_v46 = vshll.u32 %v971_v58, %v324_v49 }
  0x6f   : > { %v1168_v36 = vmul.u32.u64.low %v1132_v47, %v253_v34  ;;  %v1169_v37 = vmul.u32.u64.high %v1132_v47, %v253_v34, %v1168_v36  ;;  %v1172_v38 = vmul.u32.u64.low %v1132_v47, %v249_v33  ;;  %v1173_v39 = vmul.u32.u64.high %v1132_v47, %v249_v33, %v1172_v38 }
  0x70   : > { %v329_v41 = vor.u32 %v328_v31, %v327_v14  ;;  %v332_v44 = vor.u32 %v331_v35, %v330_v27  ;;  %v334_v48 = vshrl.u32 %v972_v60, %v325_v11  ;;  %v336_v45 = vshll.u32 %v972_v60, %v324_v49 }
  0x71   : > { %v337_v53 = vshrl.u32 %v973_v62, %v325_v11  ;;  %v339_v55 = vshll.u32 %v973_v62, %v324_v49  ;;  %v340_v57 = vshrl.u32 %v974_v6, %v325_v11  ;;  %v261_v59 = vmul.u32 %v1132_v47, %v245_v32 }
  0x72   : > { %v335_v61 = vor.u32 %v334_v48, %v333_v46  ;;  %vm342_vm7 = vcmp.lt.s32.totalorder %v1147_v0, 1  ;;  %vm343_vm8 = vcmp.lt.s32.totalorder %v1147_v0, 2  ;;  %vm263_vm9 = vc.u32 %v1169_v37, %v1172_v38 }
  0x73   : > { %v264_v63 = vadd.s32 1, %v1173_v39  ;;  %v338_v1 = vor.u32 %v337_v53, %v336_v45  ;;  %vm344_vm10 = vcmp.lt.s32.totalorder %v1147_v0, 3  ;;  %v341_v2 = vor.u32 %v340_v57, %v339_v55 }
  0x74   : > { %vm345_vm11 = vcmp.lt.s32.totalorder %v1147_v0, 4  ;;  %v346_v49 = vsel %vm342_vm7, %v326_v30, %v329_v41  ;;  %v350_v3 = vsel %vm342_vm7, %v329_v41, %v332_v44  ;;  %v354_v7 = vsel %vm342_vm7, %v332_v44, %v335_v61 }
  0x75   : > { %v265_v47 = vsel %vm263_vm9, %v264_v63, %v1173_v39  ;;  %v347_v4 = vsel %vm345_vm11, %v335_v61, 2102212464  ;;  %v351_v5 = vsel %vm345_vm11, %v338_v1, 920167782  ;;  %v355_v11 = vsel %vm345_vm11, %v341_v2, 1326507024 }
  0x76   : > { %v266_v8 = vadd.s32 %v265_v47, %v261_v59  ;;  %v348_v9 = vsel %vm344_vm10, %v332_v44, %v347_v4  ;;  %v352_v10 = vsel %vm344_vm10, %v335_v61, %v351_v5  ;;  %v356_v14 = vsel %vm344_vm10, %v338_v1, %v355_v11 }
  0x77   : > { %v349_v12 = vsel %vm343_vm8, %v346_v49, %v348_v9  ;;  %v353_v13 = vsel %vm343_vm8, %v350_v3, %v352_v10  ;;  %v426_v15 = vsel %vm425_vm6, %v1140_v52, 0  ;;  %v357_v17 = vsel %vm343_vm8, %v354_v7, %v356_v14 }
  0x78   : > { %v267_v16 = vadd.s32 536870912, %v266_v8  ;;  %v1201_v18 = vmul.u32.u64.low %v1134_v50, %v353_v13  ;;  %v1202_v23 = vmul.u32.u64.high %v1134_v50, %v353_v13, %v1201_v18  ;;  %v1207_v24 = vadd.f32 %v1130_v43, %v1128_v42 }
  0x79   : > { %v1210_v26 = vmul.u32.u64.low %v1134_v50, %v357_v17  ;;  %v1211_v27 = vmul.u32.u64.high %v1134_v50, %v357_v17, %v1210_v26  ;;  %v422_v52 = vor.u32 8388608, %v1138_v51  ;;  %v428_v29 = vand.u32 31, %v426_v15 }
  0x7a   : > { %v268_v28 = vshrl.u32 %v267_v16, 30  ;;  %v365_v0 = vmul.u32 %v1134_v50, %v349_v12  ;;  %v368_v31 = vadd.s32 1, %v1202_v23  ;;  %v518_v42 = vand.u32 2147483647, %v1207_v24 }
  0x7b   : > { %v429_v32 = vsub.s32 32, %v428_v29  ;;  %vm367_vm12 = vc.u32 %v1211_v27, %v1201_v18  ;;  %v521_v43 = vand.u32 2139095040, %v1207_v24  ;;  %v1224_v34 = vshrl.u32 %v426_v15, 5 }
  0x7c   : > { %v269_v30 = vshll.u32 %v268_v28, 30  ;;  %v369_v51 = vsel %vm367_vm12, %v368_v31, %v1202_v23  ;;  %v1226_v50 = vshll.u32 %v422_v52, 8  ;;  %v431_v36 = vshll.u32 %v969_v54, %v428_v29 }
  0x7d   : > { %v370_v35 = vadd.s32 %v369_v51, %v365_v0  ;;  %v432_v39 = vshrl.u32 %v970_v56, %v429_v32  ;;  %v434_v41 = vshll.u32 %v970_v56, %v428_v29  ;;  %v435_v46 = vshrl.u32 %v971_v58, %v429_v32 }
  0x7e   : > { %v1221_v33 = vsub.s32 %v266_v8, %v269_v30  ;;  %v437_v48 = vshll.u32 %v971_v58, %v428_v29  ;;  %v438_v45 = vshrl.u32 %v972_v60, %v429_v32  ;;  %v262_v53 = vadd.s32 %v1172_v38, %v1169_v37 }
  0x7f   : > { %v371_v55 = vadd.s32 536870912, %v370_v35  ;;  %v440_v57 = vshll.u32 %v972_v60, %v428_v29  ;;  %v522_v59 = vshrl.u32 %v521_v43, 23  ;;  %v292_v63 = vsub.s32 4, %v268_v28 }
  0x80   : > { %v272_v44 = vsub.s32 0, %v1221_v33  ;;  %v441_v1 = vshrl.u32 %v973_v62, %v429_v32  ;;  %vm449_vm14 = vcmp.lt.s32.totalorder %v1224_v34, 4  ;;  %v430_v49 = vshrl.u32 %v969_v54, %v429_v32 }
  0x81   : > { %v1241_v2 = vshrl.u32 %v371_v55, 30  ;;  %v443_v3 = vshll.u32 %v973_v62, %v428_v29  ;;  %v444_v47 = vshrl.u32 %v974_v6, %v429_v32  ;;  %v433_v4 = vor.u32 %v432_v39, %v431_v36 }
  0x82   : > { %v720_v61 = vmin.u32 %v272_v44, %v1221_v33  ;;  %v436_v5 = vor.u32 %v435_v46, %v434_v41  ;;  %v439_v7 = vor.u32 %v438_v45, %v437_v48  ;;  %v442_v9 = vor.u32 %v441_v1, %v440_v57 }
  0x83   : > { %v373_v8 = vshll.u32 %v1241_v2, 30  ;;  %vm446_vm0 = vcmp.lt.s32.totalorder %v1224_v34, 1  ;;  %vm448_vm1 = vcmp.lt.s32.totalorder %v1224_v34, 3  ;;  %v445_v11 = vor.u32 %v444_v47, %v443_v3 }
  0x84   : > { %v274_v38 = vclz %v720_v61  ;;  %v451_v12 = vsel %vm449_vm14, %v439_v7, 2102212464  ;;  %v731_v22 = vadd.s32 4294967169, %v522_v59  ;;  %v293_v13 = vsel %vm208_vm13, %v292_v63, %v268_v28 }
  0x85   : > { %v1259_v14 = vsub.s32 %v370_v35, %v373_v8  ;;  %vm447_vm2 = vcmp.lt.s32.totalorder %v1224_v34, 2  ;;  %v455_v15 = vsel %vm449_vm14, %v442_v9, 920167782  ;;  %v450_v16 = vsel %vm446_vm0, %v430_v49, %v433_v4 }
  0x86   : > { %v721_v10 = vadd.s32 4294967294, %v274_v38  ;;  %v454_v17 = vsel %vm446_vm0, %v433_v4, %v436_v5  ;;  %v456_v23 = vsel %vm448_vm1, %v439_v7, %v455_v15  ;;  %v452_v52 = vsel %vm448_vm1, %v436_v5, %v451_v12 }
  0x87   : > { %v376_v28 = vsub.s32 0, %v1259_v14  ;;  %v458_v29 = vsel %vm446_vm0, %v436_v5, %v439_v7  ;;  %v459_v32 = vsel %vm449_vm14, %v445_v11, 1326507024  ;;  %v457_v51 = vsel %vm447_vm2, %v454_v17, %v456_v23 }
  0x88   : > { %vm722_vm3 = vcmp.lt.s32.totalorder %v721_v10, 0  ;;  %v460_v35 = vsel %vm448_vm1, %v442_v9, %v459_v32  ;;  %v1285_v36 = vand.u32 8388607, %v518_v42  ;;  %v528_v44 = vadd.s32 1, %v731_v22 }
  0x89   : > { %v277_v26 = vsel %vm722_vm3, 0, %v721_v10  ;;  %v724_v43 = vmin.u32 %v376_v28, %v1259_v14  ;;  %v295_v46 = vsel %vm1248_vm15, 0, %v293_v13  ;;  %v453_v45 = vsel %vm447_vm2, %v450_v16, %v452_v52 }
  0x8a   : > { %v278_v0 = vsub.s32 32, %v277_v26  ;;  %v279_v30 = vshll.u32 %v1221_v33, %v277_v26  ;;  %v282_v31 = vsub.s32 4294967266, %v277_v26  ;;  %v461_v33 = vsel %vm447_vm2, %v458_v29, %v460_v35 }
  0x8b   : > { %v378_v48 = vclz %v724_v43  ;;  %v1294_v59 = vmul.u32.u64.low %v1226_v50, %v461_v33  ;;  %v1295_v61 = vmul.u32.u64.high %v1226_v50, %v461_v33, %v1294_v59  ;;  %vm529_vm4 = vcmp.gt.s32.totalorder %v528_v44, 0 }
  0x8c   : > { %v280_v39 = vshrl.u32 %v262_v53, %v278_v0  ;;  %v283_v41 = vadd.s32 127, %v282_v31  ;;  %v1298_v53 = vmul.u32.u64.low %v1226_v50, %v457_v51  ;;  %v1299_v1 = vmul.u32.u64.high %v1226_v50, %v457_v51, %v1298_v53 }
  0x8d   : > { %v725_v63 = vadd.s32 4294967294, %v378_v48  ;;  %v526_v47 = vor.u32 8388608, %v1285_v36  ;;  %v530_v38 = vsel %vm529_vm4, %v528_v44, 0  ;;  %v1303_v34 = vadd.s32 3, %v295_v46 }
  0x8e   : > { %v281_v55 = vor.u32 %v280_v39, %v279_v30  ;;  %v284_v57 = vshll.u32 %v283_v41, 23  ;;  %v366_v4 = vadd.s32 %v1201_v18, %v1211_v27  ;;  %v532_v5 = vand.u32 31, %v530_v38 }
  0x8f   : > { %vm726_vm5 = vcmp.lt.s32.totalorder %v725_v63, 0  ;;  %v469_v9 = vmul.u32 %v1226_v50, %v453_v45  ;;  %vm471_vm6 = vc.u32 %v1295_v61, %v1298_v53  ;;  %vm312_vm7 = vcmp.lt.s32.totalorder %v1114_v20, 0 }
  0x90   : > { %v285_v49 = vor.u32 4788187, %v284_v57  ;;  %v288_v3 = vcvt.s32.f32 %v281_v55  ;;  %v381_v8 = vsel %vm726_vm5, 0, %v725_v63  ;;  %v472_v22 = vadd.s32 1, %v1299_v1 }
  0x91   : > { %v382_v10 = vsub.s32 32, %v381_v8  ;;  %v383_v11 = vshll.u32 %v1259_v14, %v381_v8  ;;  %v386_v12 = vsub.s32 4294967266, %v381_v8  ;;  %v396_v18 = vsub.s32 4, %v1241_v2 }
  0x92   : > { %v286_v7 = vand.u32 2147483647, %v285_v49  ;;  %v1314_v27 = vshrl.u32 %v530_v38, 5  ;;  %v533_v15 = vsub.s32 32, %v532_v5  ;;  %v473_v50 = vsel %vm471_vm6, %v472_v22, %v1299_v1 }
  0x93   : > { %v384_v16 = vshrl.u32 %v366_v4, %v382_v10  ;;  %v387_v17 = vadd.s32 127, %v386_v12  ;;  %v535_v23 = vshll.u32 %v969_v54, %v532_v5  ;;  %v474_v28 = vadd.s32 %v473_v50, %v469_v9 }
  0x94   : > { %v289_v13 = vmul.f32 %v288_v3, %v286_v7  ;;  %v536_v52 = vshrl.u32 %v970_v56, %v533_v15  ;;  %v538_v14 = vshll.u32 %v970_v56, %v532_v5  ;;  %vm1322_vm8 = vcmp.le.f32.partialorder %v310_v25, 0.7853982 }
  0x95   : > { %v385_v0 = vor.u32 %v384_v16, %v383_v11  ;;  %v388_v30 = vshll.u32 %v387_v17, 23  ;;  %v539_v31 = vshrl.u32 %v971_v58, %v533_v15  ;;  %v541_v32 = vshll.u32 %v971_v58, %v532_v5 }
  0x96   : > { %v290_v26 = vxor.u32 2147483648, %v289_v13  ;;  %v475_v51 = vadd.s32 536870912, %v474_v28  ;;  %v542_v35 = vshrl.u32 %v972_v60, %v533_v15  ;;  %v544_v56 = vshll.u32 %v972_v60, %v532_v5 }
  0x97   : > { %v389_v36 = vor.u32 4788187, %v388_v30  ;;  %v392_v39 = vcvt.s32.f32 %v385_v0  ;;  %v537_v41 = vor.u32 %v536_v52, %v535_v23  ;;  %v540_v44 = vor.u32 %v539_v31, %v538_v14 }
  0x98   : > { %v291_v43 = vsel %vm208_vm13, %v290_v26, %v289_v13  ;;  %v1335_v33 = vshrl.u32 %v475_v51, 30  ;;  %v545_v58 = vshrl.u32 %v973_v62, %v533_v15  ;;  %v547_v48 = vshll.u32 %v973_v62, %v532_v5 }
  0x99   : > { %v294_v25 = vsel %vm1248_vm15, %v1112_v19, %v291_v43  ;;  %v390_v46 = vand.u32 2147483647, %v389_v36  ;;  %v548_v45 = vshrl.u32 %v974_v6, %v533_v15  ;;  %v397_v60 = vsel %vm312_vm7, %v396_v18, %v1241_v2 }
  0x9a   : > { %823 = vcosq.f32 %v294_v25  ;;  %v477_v37 = vshll.u32 %v1335_v33, 30  ;;  %v546_v55 = vor.u32 %v545_v58, %v544_v56  ;;  %vm550_vm9 = vcmp.lt.s32.totalorder %v1314_v27, 1 }
  0x9b   : > { %825 = vsinq.f32 %v294_v25  ;;  %v393_v57 = vmul.f32 %v392_v39, %v390_v46  ;;  %v534_v59 = vshrl.u32 %v969_v54, %v533_v15  ;;  %v543_v63 = vor.u32 %v542_v35, %v541_v32 }
  0x9c   : > { %v1346_v1 = vshll.u32 %v526_v47, 8  ;;  %v1348_v49 = vsub.s32 %v474_v28, %v477_v37  ;;  %v549_v62 = vor.u32 %v548_v45, %v547_v48  ;;  %vm552_vm10 = vcmp.lt.s32.totalorder %v1314_v27, 3 }
  0x9d   : > { %vm553_vm11 = vcmp.lt.s32.totalorder %v1314_v27, 4  ;;  %v394_v6 = vxor.u32 2147483648, %v393_v57  ;;  %vm551_vm12 = vcmp.lt.s32.totalorder %v1314_v27, 2  ;;  %v558_v54 = vsel %vm550_vm9, %v537_v41, %v540_v44 }
  0x9e   : > { %v555_v2 = vsel %vm553_vm11, %v543_v63, 2102212464  ;;  %v300_v3 = vand.u32 3, %v1303_v34  ;;  %v399_v47 = vsel %vm1322_vm8, 0, %v397_v60  ;;  %v480_v38 = vsub.s32 0, %v1348_v49 }
  0x9f   : > { %v559_v4 = vsel %vm553_vm11, %v546_v55, 920167782  ;;  %v395_v5 = vsel %vm312_vm7, %v394_v6, %v393_v57  ;;  %v554_v7 = vsel %vm550_vm9, %v534_v59, %v537_v41  ;;  %v556_v8 = vsel %vm552_vm10, %v540_v44, %v555_v2 }
  0xa0   : > { %v560_v34 = vsel %vm552_vm10, %v543_v63, %v559_v4  ;;  %v398_v9 = vsel %vm1322_vm8, %v1114_v20, %v395_v5  ;;  %v728_v10 = vmin.u32 %v480_v38, %v1348_v49  ;;  %v562_v12 = vsel %vm550_vm9, %v540_v44, %v543_v63 }
  0xa1   : > { %v561_v11 = vsel %vm551_vm12, %v558_v54, %v560_v34  ;;  %827 = vcosq.f32 %v398_v9  ;;  %v563_v22 = vsel %vm553_vm11, %v549_v62, 1326507024  ;;  %vm301_vm13 = vcmp.lt.s32.totalorder %v300_v3, 2 }
  0xa2   : > { %v1383_v13 = vmul.u32.u64.low %v1346_v1, %v561_v11  ;;  %v1384_v18 = vmul.u32.u64.high %v1346_v1, %v561_v11, %v1383_v13  ;;  %vm305_vm14 = vcmp.eq.s32.totalorder %v300_v3, 2  ;;  %829 = vsinq.f32 %v398_v9 }
  0xa3   : > { %v482_v16 = vclz %v728_v10  ;;  %vm302_vm15 = vcmp.eq.s32.totalorder %v300_v3, 0  ;;  %v403_v23 = vadd.s32 3, %v399_v47  ;;  %v564_v26 = vsel %vm552_vm10, %v546_v55, %v563_v22 }
  0xa4   : > { %v824_v15 = vpop.eup %823  ;;  %v557_v14 = vsel %vm551_vm12, %v554_v7, %v556_v8  ;;  %v565_v29 = vsel %vm551_vm12, %v562_v12, %v564_v26  ;;  %vm298_vm0 = vweird.f32 %v1112_v19  ;;  %v470_v43 = vadd.s32 %v1298_v53, %v1295_v61 }
  0xa5   : > { %v826_v17 = vpop.eup %825  ;;  %v306_v50 = vxor.u32 2147483648, %v824_v15  ;;  %v729_v52 = vadd.s32 4294967294, %v482_v16  ;;  %v1397_v30 = vmul.u32.u64.low %v1346_v1, %v565_v29  ;;  %v1398_v31 = vmul.u32.u64.high %v1346_v1, %v565_v29, %v1397_v30 }
  0xa6   : > { %v303_v28 = vxor.u32 2147483648, %v826_v17  ;;  %v576_v51 = vadd.s32 1, %v1384_v18  ;;  %v404_v56 = vand.u32 3, %v403_v23  ;;  %v573_v27 = vmul.u32 %v1346_v1, %v557_v14 }
  0xa7   : > { %v307_v0 = vsel %vm305_vm14, %v306_v50, %v826_v17  ;;  %vm730_vm1 = vcmp.lt.s32.totalorder %v729_v52, 0  ;;  %vm575_vm2 = vc.u32 %v1398_v31, %v1383_v13  ;;  %vm402_vm6 = vweird.f32 %v1114_v20 }
  0xa8   : > { %v304_v32 = vsel %vm302_vm15, %v824_v15, %v303_v28  ;;  %v485_v25 = vsel %vm730_vm1, 0, %v729_v52  ;;  %v577_v44 = vsel %vm575_vm2, %v576_v51, %v1384_v18  ;;  %vm409_vm3 = vcmp.eq.s32.totalorder %v404_v56, 2 }
  0xa9   : > { %v308_v35 = vsel %vm301_vm13, %v304_v32, %v307_v0  ;;  %v486_v19 = vsub.s32 32, %v485_v25  ;;  %v487_v39 = vshll.u32 %v1348_v49, %v485_v25  ;;  %v490_v41 = vsub.s32 4294967266, %v485_v25 }
  0xaa   : > { %v309_v36 = vsel %vm298_vm0, nan, %v308_v35  ;;  %v578_v46 = vadd.s32 %v577_v44, %v573_v27  ;;  %vm406_vm4 = vcmp.eq.s32.totalorder %v404_v56, 0  ;;  %vm405_vm5 = vcmp.lt.s32.totalorder %v404_v56, 2 }
  0xab   : > { %622 = vst [vmem:[%s1408_s3] sm:$0xff] %v309_v36  ;;  %v488_v61 = vshrl.u32 %v470_v43, %v486_v19  ;;  %v491_v53 = vadd.s32 127, %v490_v41  ;;  %v828_v58 = vpop.eup %827  ;;  %v500_v54 = vsub.s32 4, %v1335_v33  ;;  %vm416_vm7 = vcmp.lt.s32.totalorder %v1116_v21, 0 }
  0xac   : > { %v830_v48 = vpop.eup %829  ;;  %v410_v45 = vxor.u32 2147483648, %v828_v58  ;;  %v579_v57 = vadd.s32 536870912, %v578_v46  ;;  %vm415_vm8 = vcmp.le.f32.partialorder %v414_v40, 0.7853982  ;;  %v574_v18 = vadd.s32 %v1383_v13, %v1398_v31 }
  0xad   : > { %v489_v60 = vor.u32 %v488_v61, %v487_v39  ;;  %v492_v37 = vshll.u32 %v491_v53, 23  ;;  %v407_v55 = vxor.u32 2147483648, %v830_v48  ;;  %v501_v5 = vsel %vm416_vm7, %v500_v54, %v1335_v33 }
  0xae   : > { %v411_v59 = vsel %vm409_vm3, %v410_v45, %v830_v48  ;;  %v580_v62 = vshrl.u32 %v579_v57, 30  ;;  %v503_v9 = vsel %vm415_vm8, 0, %v501_v5  ;;  %vm506_vm13 = vweird.f32 %v1116_v21 }
  0xaf   : > { %v493_v63 = vor.u32 4788187, %v492_v37  ;;  %v496_v1 = vcvt.s32.f32 %v489_v60  ;;  %v408_v49 = vsel %vm406_vm4, %v828_v58, %v407_v55  ;;  %v507_v12 = vadd.s32 3, %v503_v9 }
  0xb0   : > { %v412_v6 = vsel %vm405_vm5, %v408_v49, %v411_v59  ;;  %v581_v47 = vshll.u32 %v580_v62, 30  ;;  %v604_v35 = vsub.s32 4, %v580_v62  ;;  %vm520_vm14 = vcmp.lt.s32.totalorder %v1207_v24, 0 }
  0xb1   : > { %v494_v2 = vand.u32 2147483647, %v493_v63  ;;  %v413_v3 = vsel %vm402_vm6, nan, %v412_v6  ;;  %v508_v15 = vand.u32 3, %v507_v12  ;;  %vm519_vm15 = vcmp.le.f32.partialorder %v518_v42, 0.7853982 }
  0xb2   : > { %623 = vst [vmem:[%s1408_s3 + $0x8] sm:$0xff] %v413_v3  ;;  %v582_v4 = vsub.s32 %v578_v46, %v581_v47  ;;  %v605_v36 = vsel %vm520_vm14, %v604_v35, %v580_v62  ;;  %vm610_vm3 = vweird.f32 %v1207_v24 }
  0xb3   : > { %v497_v38 = vmul.f32 %v496_v1, %v494_v2  ;;  %vm513_vm10 = vcmp.eq.s32.totalorder %v508_v15, 2  ;;  %vm510_vm11 = vcmp.eq.s32.totalorder %v508_v15, 0  ;;  %vm509_vm12 = vcmp.lt.s32.totalorder %v508_v15, 2 }
  0xb4   : > { %v584_v7 = vsub.s32 0, %v582_v4  ;;  %v607_v39 = vsel %vm519_vm15, 0, %v605_v36 }
  0xb5   : > { %v498_v20 = vxor.u32 2147483648, %v497_v38  ;;  %v611_v41 = vadd.s32 3, %v607_v39 }
  0xb6   : > { %v732_v10 = vmin.u32 %v584_v7, %v582_v4 }
  0xb7   : > { %v499_v8 = vsel %vm416_vm7, %v498_v20, %v497_v38  ;;  %v612_v61 = vand.u32 3, %v611_v41 }
  0xb8   : > { %v502_v34 = vsel %vm415_vm8, %v1116_v21, %v499_v8  ;;  %v586_v11 = vclz %v732_v10 }
  0xb9   : > { %831 = vcosq.f32 %v502_v34  ;;  %vm617_vm0 = vcmp.eq.s32.totalorder %v612_v61, 2  ;;  %vm614_vm1 = vcmp.eq.s32.totalorder %v612_v61, 0  ;;  %vm613_vm2 = vcmp.lt.s32.totalorder %v612_v61, 2 }
  0xba   : > { %833 = vsinq.f32 %v502_v34  ;;  %v733_v22 = vadd.s32 4294967294, %v586_v11 }
  0xbc   : > { %vm734_vm9 = vcmp.lt.s32.totalorder %v733_v22, 0 }
  0xbd   : > { %v589_v40 = vsel %vm734_vm9, 0, %v733_v22 }
  0xbe   : > { %v590_v16 = vsub.s32 32, %v589_v40  ;;  %v591_v17 = vshll.u32 %v582_v4, %v589_v40  ;;  %v594_v33 = vsub.s32 4294967266, %v589_v40 }
  0xc0   : > { %v592_v50 = vshrl.u32 %v574_v18, %v590_v16  ;;  %v595_v23 = vadd.s32 127, %v594_v33 }
  0xc2   : > { %v593_v14 = vor.u32 %v592_v50, %v591_v17  ;;  %v596_v29 = vshll.u32 %v595_v23, 23 }
  0xc3   : > { %v832_v26 = vpop.eup %831 }
  0xc4   : > { %v834_v28 = vpop.eup %833  ;;  %v514_v52 = vxor.u32 2147483648, %v832_v26  ;;  %v597_v30 = vor.u32 4788187, %v596_v29  ;;  %v600_v31 = vcvt.s32.f32 %v593_v14 }
  0xc5   : > { %v511_v0 = vxor.u32 2147483648, %v834_v28 }
  0xc6   : > { %v515_v13 = vsel %vm513_vm10, %v514_v52, %v834_v28  ;;  %v598_v51 = vand.u32 2147483647, %v597_v30 }
  0xc7   : > { %v512_v32 = vsel %vm510_vm11, %v832_v26, %v511_v0 }
  0xc8   : > { %v516_v43 = vsel %vm509_vm12, %v512_v32, %v515_v13  ;;  %v601_v25 = vmul.f32 %v600_v31, %v598_v51 }
  0xc9   : > { %v517_v56 = vsel %vm506_vm13, nan, %v516_v43 }
  0xca   : > { %624 = vst [vmem:[%s1408_s3 + $0x10] sm:$0xff] %v517_v56  ;;  %v602_v27 = vxor.u32 2147483648, %v601_v25 }
  0xcc   : > { %v603_v21 = vsel %vm520_vm14, %v602_v27, %v601_v25 }
  0xcd   : > { %v606_v19 = vsel %vm519_vm15, %v1207_v24, %v603_v21 }
  0xce   : > { %835 = vcosq.f32 %v606_v19 }
  0xcf   : > { %837 = vsinq.f32 %v606_v19 }
  0xd8   : > { %v836_v53 = vpop.eup %835 }
  0xd9   : > { %v838_v44 = vpop.eup %837  ;;  %v618_v58 = vxor.u32 2147483648, %v836_v53 }
  0xda   : > { %v615_v42 = vxor.u32 2147483648, %v838_v44 }
  0xdb   : > { %v619_v46 = vsel %vm617_vm0, %v618_v58, %v838_v44 }
  0xdc   : > { %v616_v48 = vsel %vm614_vm1, %v836_v53, %v615_v42 }
  0xdd   : > { %v620_v45 = vsel %vm613_vm2, %v616_v48, %v619_v46 }
  0xde   : > { %v621_v60 = vsel %vm610_vm3, nan, %v620_v45 }
  0xdf   : > { %625 = vst [vmem:[%s1408_s3 + $0x18] sm:$0xff] %v621_v60 }
  0xe0   : > { %908 = shalt.err (!%p905_p8)
}
  0xe1   : > { %s909_s24 = scalar_lea.hbm %s1434_s8, 512  ;;  %s913_s23 = scalar_lea.hbm %s1481_s2, 1024 }
  0xe2   : > { %p910_p11 = scmp.ne.s32.totalorder %s1434_s8, %s909_s24  ;;  %p914_p0 = scmp.lt.u32.totalorder %s1434_s8, %s1481_s2 }
  0xe3   : > { %p915_p5 = scmp.lt.u32.totalorder %s913_s23, %s909_s24  ;;  %p917_p12 = scmp.lt.u32.totalorder %s909_s24, %s1434_s8 }
  0xe4   : > { %p911_p13 = pnand %p910_p11, %p1498_p10 }
  0xe5   : > { %p916_p9 = por %p915_p5, %p914_p0 }
  0xe6   : > { %p912_p6 = pneg %p911_p13 }
  0xe7   : > { %p918_p1 = por %p917_p12, %p916_p9 }
  0xe9   : > { %p919_p2 = pnand %p918_p1, %p912_p6 }
  0xeb   : > { %922 = shalt.err (!%p919_p2)
}
  0xec   : > { %765 = dma.vmem_to_hbm [thread:$0]  (%p1498_p10), %s1436_s5, 512, %s1434_s8, %s627_s13  }
  0xed PF: > { %p782_p3 = scmp.ge.s32.totalorder %s965_s12, 2  ;;  %s653_s26 = sand.u32 1, %s953_s9  }
  0xee   : > { %p1499_p4 = scmp.ne.s32.totalorder %s1486_s20, 0  ;;  %s654_s21 = scalar_lea.sflag [#allocation4], %s653_s26 }
  0xf0   : > { %p775_p7 = pnand %p782_p3, %p1499_p4 }
  0xf2   : > { %948 = dma.done.wait (!%p775_p7), %s654_s21, 512  }
  0xf3   : > { %950 = vsyncadd (!%p775_p7), %s654_s21, 4294966784  ;;  %p14_p8 = scmp.ge.s32.totalorder %s1016_s15, 4   ;;  %s1500_s9 = smov %s957_s10 }
  0xf4   : > { %s1501_s10 = smov %s961_s11  ;;  %s1502_s11 = smov %s1027_s18 }
  0xf5   : > { %s1503_s12 = smov %s1016_s15  ;;  %16 = sbr.rel (!%p14_p8) target bundleno = 5 (0x5), region = 69 }
  0xfc   :  { %659 = vsyncpa [#allocation3], 1 }
  0xfd   :  { %661 = vsyncpa [#allocation3 + $0x1], 1 }
  0xfe   :  { %662 = vsyncpa [#allocation6], 1 }
  0xff   :  { %663 = vsyncpa [#allocation4], 1 }
 0x100   :  { %665 = vsyncpa [#allocation4 + $0x1], 1 }

</bundles_post_ra>
